<compile_context>
chip_gen: v5e
topology: v5e:2x2
jax: 0.10.0
libtpu: 0.0.40
codegen_flags: <defaults>
</compile_context>

<pallas_src>
import functools

import jax
import jax.numpy as jnp
from jax import lax
from jax.experimental import pallas as pl
from jax.experimental.pallas import tpu as pltpu


def _round_up(x, m):
    return (x + m - 1) // m * m


# ----------------------------------------------------------------------------
# Fused update (index_add_ running average) + prediction, tiled over N1.
# ----------------------------------------------------------------------------
def _fused_update_predict_kernel(amin, amax,
                                 ids_ref, ratings_ext_ref, w_ref, params_ext_ref,
                                 new_params_ref, preds_ref):
    # ids_ref:        (1, B)  i32   (lane-dense, resident)
    # ratings_ext_ref:(B, A+1) f32  (ratings | ones column, resident)
    # w_ref:          (B, A)  f32   (resident)
    # params_ext_ref: (TILE_N, A+1) f32  (params | counters column, streamed)
    # new_params_ref: (TILE_N, A)   f32  (streamed out)
    # preds_ref:      (1, B)  f32   (resident accumulator, lane-dense)
    t = pl.program_id(0)
    tile_n = params_ext_ref.shape[0]
    B = w_ref.shape[0]
    A = w_ref.shape[1]

    # One-hot built directly in (TILE_N, B) orientation -> no XLU transpose,
    # and B sits on the lane axis.
    base = t * tile_n
    rows = lax.broadcasted_iota(jnp.int32, (tile_n, B), 0) + base
    onehot = (rows == ids_ref[...]).astype(jnp.float32)               # (TILE_N, B)

    # Scatter-add of ratings AND counts in a single MXU matmul:
    # column A of the result is the per-item count increment.
    scat = jnp.dot(onehot, ratings_ext_ref[...],
                   preferred_element_type=jnp.float32)                # (TILE_N, A+1)

    old_params = params_ext_ref[:, :A]                                # (TILE_N, A)
    old_cnt = params_ext_ref[:, A:]                                   # (TILE_N, 1)
    new_cnt = old_cnt + scat[:, A:]                                   # (TILE_N, 1)
    # exact division (pl.reciprocal(approx=True) would break 1e-5 tolerance)
    new_p = (old_params * old_cnt + scat[:, :A]) / jnp.maximum(new_cnt, 1.0)
    new_params_ref[...] = new_p

    # Fused prediction on the just-updated, still-VMEM-resident tile:
    #   preds[b] += onehot[id_b - base, b] * sum_a w[b,a] * clip(new_p[id_b, a])
    g = jnp.clip(new_p, amin, amax)                                   # (TILE_N, A)
    s = lax.dot_general(g, w_ref[...], (((1,), (1,)), ((), ())),
                        preferred_element_type=jnp.float32)           # (TILE_N, B)
    contrib = jnp.sum(onehot * s, axis=0, keepdims=True)              # (1, B)

    @pl.when(t == 0)
    def _():
        preds_ref[...] = jnp.zeros_like(preds_ref)

    preds_ref[...] = preds_ref[...] + contrib


# ----------------------------------------------------------------------------
# Inference predict: scalar-prefetch row gather (no one-hot, no big matmul).
# ----------------------------------------------------------------------------
def _predict_kernel(amin, amax, group, ids_ref, w_ref, params_blk_ref, out_ref):
    # ids_ref:        (B,) i32 in SMEM (scalar prefetch)
    # w_ref:          (B, A) f32        (resident)
    # params_blk_ref: (group, A) f32    row-group containing params[ids[i]]
    # out_ref:        (B, 1) f32        (resident, written row-by-row)
    i = pl.program_id(0)
    r = ids_ref[i] % group                                            # row inside group
    row = jnp.clip(params_blk_ref[pl.ds(r, 1), :], amin, amax)        # (1, A)
    w = w_ref[pl.ds(i, 1), :]                                         # (1, A)
    out_ref[pl.ds(i, 1), :] = jnp.sum(w * row, axis=1, keepdims=True)


# ----------------------------------------------------------------------------
# Wrapper
# ----------------------------------------------------------------------------
def average_item_profile_forward(items_parameters, items_counters, I_ids, A_weights,
                                 A_ratings=None, *,
                                 aspect_min_rating=1.0, aspect_max_rating=5.0):
    """Returns (predictions (B,), updated items_parameters (N+1, A))."""
    B = I_ids.shape[0]
    N1, A = items_parameters.shape
    items_parameters = items_parameters.astype(jnp.float32)
    A_weights = A_weights.astype(jnp.float32)
    # torch would raise on out-of-range ids; clamp defensively so the
    # data-dependent gather never issues an OOB block DMA.
    ids = jnp.clip(I_ids.astype(jnp.int32), 0, N1 - 1)

    if A_ratings is not None:
        # ---------------- fused update + predict (single pallas_call) --------
        tile_n = min(512, _round_up(N1, 8))
        n1p = _round_up(N1, tile_n)

        # counters fused as a trailing column of the parameter table
        params_ext = jnp.concatenate(
            [items_parameters,
             items_counters.astype(jnp.float32).reshape(N1, 1)], axis=1)
        if n1p != N1:
            params_ext = jnp.pad(params_ext, ((0, n1p - N1), (0, 0)))
        # ones column folds the counter increment into the scatter matmul
        ratings_ext = jnp.concatenate(
            [A_ratings.astype(jnp.float32), jnp.ones((B, 1), jnp.float32)], axis=1)
        ids_row = ids.reshape(1, B)

        new_params_p, preds_row = pl.pallas_call(
            functools.partial(_fused_update_predict_kernel,
                              aspect_min_rating, aspect_max_rating),
            out_shape=(jax.ShapeDtypeStruct((n1p, A), jnp.float32),
                       jax.ShapeDtypeStruct((1, B), jnp.float32)),
            grid_spec=pltpu.PrefetchScalarGridSpec(
                num_scalar_prefetch=0,
                grid=(n1p // tile_n,),
                in_specs=[
                    pl.BlockSpec((1, B), lambda t: (0, 0)),            # ids
                    pl.BlockSpec((B, A + 1), lambda t: (0, 0)),        # ratings|1
                    pl.BlockSpec((B, A), lambda t: (0, 0)),            # weights
                    pl.BlockSpec((tile_n, A + 1), lambda t: (t, 0)),   # params|cnt
                ],
                out_specs=[
                    pl.BlockSpec((tile_n, A), lambda t: (t, 0)),       # new params
                    pl.BlockSpec((1, B), lambda t: (0, 0)),            # predictions
                ]),
            compiler_params=pltpu.CompilerParams(
                dimension_semantics=("arbitrary",)),                   # preds accumulate
        )(ids_row, ratings_ext, A_weights, params_ext)

        new_params = new_params_p[:N1]
        return preds_row.reshape(B), new_params

    # ---------------- inference: scalar-prefetch row gather ------------------
    group = 8 if N1 >= 8 else N1
    preds = pl.pallas_call(
        functools.partial(_predict_kernel, aspect_min_rating, aspect_max_rating, group),
        out_shape=jax.ShapeDtypeStruct((B, 1), jnp.float32),
        grid_spec=pltpu.PrefetchScalarGridSpec(
            num_scalar_prefetch=1,                                     # ids -> SMEM
            grid=(B,),
            in_specs=[
                pl.BlockSpec((B, A), lambda i, ids: (0, 0)),           # weights (resident)
                pl.BlockSpec((group, A),
                             lambda i, ids: (ids[i] // group, 0)),     # row-group gather
            ],
            out_specs=pl.BlockSpec((B, 1), lambda i, ids: (0, 0))),
        compiler_params=pltpu.CompilerParams(
            dimension_semantics=("arbitrary",)),
    )(ids, A_weights, items_parameters)
    return preds.reshape(B), items_parameters


# ----------------------------------------------------------------------------
# Pure-JAX reference (mirrors the torch module) + demo
# ----------------------------------------------------------------------------
def _reference_forward(params, counters, ids, w, ratings=None, amin=1.0, amax=5.0):
    if ratings is not None:
        p = params * counters[:, None]
        p = p.at[ids].add(ratings)
        counts = counters.at[ids].add(1.0)
        params = p / jnp.maximum(counts, 1.0)[:, None]
    gathered = jnp.clip(params[ids], amin, amax)
    return jnp.sum(w * gathered, axis=1), params


if __name__ == "__main__":
    # Small deterministic config: n_items=31 (table has 32 rows), n_aspects=8, batch=8
    n_items, n_aspects, batch = 31, 8, 8
    aspect_min, aspect_max = 1.0, 5.0

    key = jax.random.PRNGKey(0)
    k_ids, k_w, k_r = jax.random.split(key, 3)
    I_ids = jax.random.randint(k_ids, (batch,), 0, n_items + 1, dtype=jnp.int32)
    A_weights = jax.random.uniform(k_w, (batch, n_aspects), jnp.float32)
    A_ratings = jax.random.uniform(k_r, (batch, n_aspects), jnp.float32,
                                   minval=aspect_min, maxval=aspect_max)

    # Module state, initialized exactly like __init__ (zeros)
    items_parameters = jnp.zeros((n_items + 1, n_aspects), jnp.float32)
    items_counters = jnp.zeros((n_items + 1,), jnp.float32)

    # forward with A_ratings (fused state update + predictions, one kernel)
    preds1, items_parameters = average_item_profile_forward(
        items_parameters, items_counters, I_ids, A_weights, A_ratings,
        aspect_min_rating=aspect_min, aspect_max_rating=aspect_max)
    # forward without A_ratings (pure prediction path, row-gather kernel)
    preds2, _ = average_item_profile_forward(
        items_parameters, items_counters, I_ids, A_weights, None,
        aspect_min_rating=aspect_min, aspect_max_rating=aspect_max)
    jax.block_until_ready((preds1, preds2, items_parameters))

    # correctness check against pure-JAX reference
    ref_p1, ref_params = _reference_forward(
        jnp.zeros((n_items + 1, n_aspects), jnp.float32), items_counters,
        I_ids, A_weights, A_ratings, aspect_min, aspect_max)
    ref_p2, _ = _reference_forward(ref_params, items_counters, I_ids, A_weights,
                                   None, aspect_min, aspect_max)
    assert jnp.allclose(preds1, ref_p1, atol=1e-5), (preds1, ref_p1)
    assert jnp.allclose(items_parameters, ref_params, atol=1e-5)
    assert jnp.allclose(preds2, ref_p2, atol=1e-5), (preds2, ref_p2)

    print("KERNEL_OK")
</pallas_src>

<mosaic_0001>
module attributes {stable_mosaic.version = 11 : i64} {
  func.func @_fused_update_predict_kernel(%arg0: i32, %arg1: memref<1x8xi32, #tpu.memory_space<vmem>>, %arg2: memref<8x9xf32, #tpu.memory_space<vmem>>, %arg3: memref<8x8xf32, #tpu.memory_space<vmem>>, %arg4: memref<32x9xf32, #tpu.memory_space<vmem>>, %arg5: memref<32x8xf32, #tpu.memory_space<vmem>>, %arg6: memref<1x8xf32, #tpu.memory_space<vmem>>) attributes {dimension_semantics = [#tpu.dimension_semantics<arbitrary>], iteration_bounds = array<i64: 1>, scalar_prefetch = 0 : i64, scratch_operands = 0 : i64, tpu.core_type = #tpu.core_type<tc>, window_params = [{pipeline_mode = #tpu.pipeline_mode<synchronous>, transform_indices = @transform_0, window_bounds = array<i64: 1, 8>}, {pipeline_mode = #tpu.pipeline_mode<synchronous>, transform_indices = @transform_1, window_bounds = array<i64: 8, 9>}, {pipeline_mode = #tpu.pipeline_mode<synchronous>, transform_indices = @transform_2, window_bounds = array<i64: 8, 8>}, {transform_indices = @transform_3, window_bounds = array<i64: 32, 9>}, {transform_indices = @transform_4, window_bounds = array<i64: 32, 8>}, {pipeline_mode = #tpu.pipeline_mode<synchronous>, transform_indices = @transform_5, window_bounds = array<i64: 1, 8>}]} {
    %c32_i32 = arith.constant 32 : i32
    %0 = arith.muli %arg0, %c32_i32 : i32
    %1 = tpu.iota {dimensions = array<i32: 0>} : vector<32x8xi32>
    %2 = vector.broadcast %0 : i32 to vector<32x8xi32>
    %3 = arith.addi %1, %2 : vector<32x8xi32>
    %c0 = arith.constant 0 : index
    %c0_0 = arith.constant 0 : index
    %4 = vector.load %arg1[%c0, %c0_0] : memref<1x8xi32, #tpu.memory_space<vmem>>, vector<1x8xi32>
    %5 = vector.broadcast %4 : vector<1x8xi32> to vector<32x8xi32>
    %6 = arith.cmpi eq, %3, %5 : vector<32x8xi32>
    %7 = arith.extui %6 : vector<32x8xi1> to vector<32x8xi32>
    %8 = arith.sitofp %7 : vector<32x8xi32> to vector<32x8xf32>
    %c0_1 = arith.constant 0 : index
    %c0_2 = arith.constant 0 : index
    %9 = vector.load %arg2[%c0_1, %c0_2] : memref<8x9xf32, #tpu.memory_space<vmem>>, vector<8x9xf32>
    %cst = arith.constant dense<0.000000e+00> : vector<32x9xf32>
    %10 = tpu.matmul %8, %9, %cst {dimension_numbers = #tpu.dot_dimension_numbers<[1], [0], [0], [1], [0, 0, 1, 1], [], []>} : vector<32x8xf32>, vector<8x9xf32>, vector<32x9xf32> -> vector<32x9xf32>
    %c0_3 = arith.constant 0 : index
    %c0_4 = arith.constant 0 : index
    %11 = vector.load %arg4[%c0_3, %c0_4] : memref<32x9xf32, #tpu.memory_space<vmem>>, vector<32x8xf32>
    %c0_5 = arith.constant 0 : index
    %c8 = arith.constant 8 : index
    %12 = vector.load %arg4[%c0_5, %c8] : memref<32x9xf32, #tpu.memory_space<vmem>>, vector<32x1xf32>
    %13 = vector.extract_strided_slice %10 {offsets = [0, 8], sizes = [32, 1], strides = [1, 1]} : vector<32x9xf32> to vector<32x1xf32>
    %14 = arith.addf %12, %13 : vector<32x1xf32>
    %15 = vector.broadcast %12 : vector<32x1xf32> to vector<32x8xf32>
    %16 = arith.mulf %11, %15 : vector<32x8xf32>
    %17 = vector.extract_strided_slice %10 {offsets = [0, 0], sizes = [32, 8], strides = [1, 1]} : vector<32x9xf32> to vector<32x8xf32>
    %18 = arith.addf %16, %17 : vector<32x8xf32>
    %cst_6 = arith.constant 1.000000e+00 : f32
    %19 = vector.broadcast %cst_6 : f32 to vector<32x1xf32>
    %20 = arith.maximumf %14, %19 : vector<32x1xf32>
    %21 = vector.broadcast %20 : vector<32x1xf32> to vector<32x8xf32>
    %22 = arith.divf %18, %21 : vector<32x8xf32>
    %c0_7 = arith.constant 0 : index
    %c0_8 = arith.constant 0 : index
    %23 = vector.load %arg5[%c0_7, %c0_8] : memref<32x8xf32, #tpu.memory_space<vmem>>, vector<32x8xf32>
    tpu.vector_store %arg5[%c0_7, %c0_8], %22 {strides = array<i32>} : memref<32x8xf32, #tpu.memory_space<vmem>>, vector<32x8xf32>,
    %cst_9 = arith.constant 1.000000e+00 : f32
    %cst_10 = arith.constant 5.000000e+00 : f32
    %24 = vector.broadcast %cst_9 : f32 to vector<32x8xf32>
    %25 = arith.maximumf %24, %22 : vector<32x8xf32>
    %26 = vector.broadcast %cst_10 : f32 to vector<32x8xf32>
    %27 = arith.minimumf %26, %25 : vector<32x8xf32>
    %c0_11 = arith.constant 0 : index
    %c0_12 = arith.constant 0 : index
    %28 = vector.load %arg3[%c0_11, %c0_12] : memref<8x8xf32, #tpu.memory_space<vmem>>, vector<8x8xf32>
    %cst_13 = arith.constant dense<0.000000e+00> : vector<32x8xf32>
    %29 = tpu.matmul %27, %28, %cst_13 {dimension_numbers = #tpu.dot_dimension_numbers<[1], [1], [0], [0], [0, 0, 1, 0], [], []>} : vector<32x8xf32>, vector<8x8xf32>, vector<32x8xf32> -> vector<32x8xf32>
    %30 = arith.mulf %8, %29 : vector<32x8xf32>
    %cst_14 = arith.constant dense<0.000000e+00> : vector<8xf32>
    %31 = vector.multi_reduction <add>, %30, %cst_14 [0] : vector<32x8xf32> to vector<8xf32>
    %32 = vector.shape_cast %31 : vector<8xf32> to vector<1x8xf32>
    %c0_i32 = arith.constant 0 : i32
    %33 = arith.cmpi eq, %arg0, %c0_i32 : i32
    %34 = arith.extui %33 : i1 to i32
    %c0_i32_15 = arith.constant 0 : i32
    %35 = arith.cmpi ne, %34, %c0_i32_15 : i32
    scf.if %35 {
      %cst_20 = arith.constant 0.000000e+00 : f32
      %39 = vector.broadcast %cst_20 : f32 to vector<1x8xf32>
      %c0_21 = arith.constant 0 : index
      %c0_22 = arith.constant 0 : index
      %40 = vector.load %arg6[%c0_21, %c0_22] : memref<1x8xf32, #tpu.memory_space<vmem>>, vector<1x8xf32>
      tpu.vector_store %arg6[%c0_21, %c0_22], %39 {strides = array<i32>} : memref<1x8xf32, #tpu.memory_space<vmem>>, vector<1x8xf32>,
    } else {
    }
    %c0_16 = arith.constant 0 : index
    %c0_17 = arith.constant 0 : index
    %36 = vector.load %arg6[%c0_16, %c0_17] : memref<1x8xf32, #tpu.memory_space<vmem>>, vector<1x8xf32>
    %37 = arith.addf %36, %32 : vector<1x8xf32>
    %c0_18 = arith.constant 0 : index
    %c0_19 = arith.constant 0 : index
    %38 = vector.load %arg6[%c0_18, %c0_19] : memref<1x8xf32, #tpu.memory_space<vmem>>, vector<1x8xf32>
    tpu.vector_store %arg6[%c0_18, %c0_19], %37 {strides = array<i32>} : memref<1x8xf32, #tpu.memory_space<vmem>>, vector<1x8xf32>,
    return
  }
  func.func @transform_0(%arg0: i32) -> (i32, i32) {
    %c0_i32 = arith.constant 0 : i32
    %c0_i32_0 = arith.constant 0 : i32
    %c0_i32_1 = arith.constant 0 : i32
    return %c0_i32, %c0_i32_0 : i32, i32
  }
  func.func @transform_1(%arg0: i32) -> (i32, i32) {
    %c0_i32 = arith.constant 0 : i32
    %c0_i32_0 = arith.constant 0 : i32
    %c0_i32_1 = arith.constant 0 : i32
    return %c0_i32, %c0_i32_0 : i32, i32
  }
  func.func @transform_2(%arg0: i32) -> (i32, i32) {
    %c0_i32 = arith.constant 0 : i32
    %c0_i32_0 = arith.constant 0 : i32
    %c0_i32_1 = arith.constant 0 : i32
    return %c0_i32, %c0_i32_0 : i32, i32
  }
  func.func @transform_3(%arg0: i32) -> (i32, i32) {
    %c0_i32 = arith.constant 0 : i32
    %c0_i32_0 = arith.constant 0 : i32
    return %arg0, %c0_i32 : i32, i32
  }
  func.func @transform_4(%arg0: i32) -> (i32, i32) {
    %c0_i32 = arith.constant 0 : i32
    %c0_i32_0 = arith.constant 0 : i32
    return %arg0, %c0_i32 : i32, i32
  }
  func.func @transform_5(%arg0: i32) -> (i32, i32) {
    %c0_i32 = arith.constant 0 : i32
    %c0_i32_0 = arith.constant 0 : i32
    %c0_i32_1 = arith.constant 0 : i32
    return %c0_i32, %c0_i32_0 : i32, i32
  }
}

</mosaic_0001>

<bundles_post_ra>
// kernel: tpu_custom_call.1
= control target key start
LH: loop header
LB: loop body
LE: loop exit
PB: predicated region body
PF: predicated region fallthrough
CT: control target
= control target key end

     0   :  { %v21_v1 = vlaneseq  ;;  %s513_s0 = inlined_call_operand.vmem [shape: s32[1,8], index: 0, kind: input, shape index: {}]   ;;  %s514_s1 = inlined_call_operand.vmem [shape: f32[8,9], index: 1, kind: input, shape index: {}]   ;;  %s515_s2 = inlined_call_operand.vmem [shape: f32[8,8], index: 2, kind: input, shape index: {}]   ;;  %s516_s3 = inlined_call_operand.vmem [shape: f32[32,9], index: 3, kind: input, shape index: {}]   ;;  %s517_s4 = inlined_call_operand.vmem [shape: f32[32,8], index: 4, kind: output, shape index: {0}]   ;;  %s518_s5 = inlined_call_operand.hbm [shape: f32[1,8], index: 5, kind: output, shape index: {1}]  }
   0x1   :  { %v45_v0 = vld [vmem:[%s514_s1] sm:$0xff]  ;;  %v407_v2 = vld [vmem:[%s516_s3 + $0x10] sm:$0xff] }
   0x2   :  { %325 = vmatpush.msra.mxu3 %v45_v0  ;;  %74 = vmatpush.msra.mxu0 %v45_v0 }
   0x3   :  { %11 = vsyncpa [#allocation3], 0  ;;  %v22_v3 = vshrl.u32 %v21_v1, 7  ;;  %v333_v4 = vld [vmem:[%s513_s0] ss:$0 sm:$0xff]  ;;  %v368_v5 = vmov 8  }
   0x4   :  { %332 = vset.pattern.permute.xlu2 %v368_v5  ;;  %330 = vset.pattern.permute.xlu0 %v368_v5  ;;  %vm46_vm1 = vcmask 64512   ;;  %v369_v7 = vmov 0.0   ;;  %v88_v11 = vld [vmem:[%s516_s3] sm:$0xff]  ;;  %v91_v21 = vld [vmem:[%s516_s3 + $0x18] sm:$0xff]  ;;  %v451_v26 = vld [vmem:[%s516_s3 + $0x8] sm:$0xff]  ;;  %s301_s14 = sshll.u32 %s518_s5, 4  ;;  %s302_s14 = int_to_ptr.hbm [resolvable:$true] %s301_s14 }
   0x5   :  { %108 = vperm.xlu2 %332, %v407_v2   ;;  %331 = vset.pattern.permute.xlu1 %v368_v5  ;;  %v23_v6 = vadd.s32 8, %v22_v3  ;;  %vm33_vm0 = vcmp.eq.s32.totalorder %v22_v3, %v333_v4  ;;  %v24_v9 = vadd.s32 16, %v22_v3  ;;  %v25_v13 = vadd.s32 24, %v22_v3  ;;  %v220_v29 = vld [vmem:[%s515_s2] sm:$0xff] }
   0x6   :  { %v414_v8 = vsel %vm33_vm0, 1.0, %v369_v7  ;;  %326 = vmatpush.xpose.msk.msra.mxu2 %vm46_vm1, %v220_v29  ;;  %320 = vmatpush.xpose.msk.msra.mxu1 %vm46_vm1, %v220_v29 }
   0x7   :  { %vm34_vm2 = vcmp.eq.s32.totalorder %v23_v6, %v333_v4  ;;  %316 = vmatmul.msk.f32.vlgmr.msra.gmra.mxu0 %vm46_vm1, %v414_v8  ;;  %vm35_vm3 = vcmp.eq.s32.totalorder %v24_v9, %v333_v4  ;;  %vm36_vm4 = vcmp.eq.s32.totalorder %v25_v13, %v333_v4 }
   0x8   :  { %v419_v10 = vsel %vm34_vm2, 1.0, %v369_v7  ;;  %v427_v12 = vsel %vm35_vm3, 1.0, %v369_v7  ;;  %v432_v14 = vsel %vm36_vm4, 1.0, %v369_v7 }
   0x9   :  { %317 = vmatmul.msk.f32.vlgmr.msra.gmra.mxu3 %vm46_vm1, %v419_v10 }
   0xd   :  { %98 = vperm.xlu2 %332, %v88_v11  }
  0x11   :  { %318 = vmatmul.msk.f32.gmra.mxu3 %vm46_vm1, %v427_v12 }
  0x19   :  { %319 = vmatmul.msk.f32.gmra.mxu3 %vm46_vm1, %v432_v14 }
  0x5f   :  { %v109_v31 = vpop.permute.xlu2 %108 }
  0x60   :  { %v118_v39 = vmul.f32 %v109_v31, %v407_v2 }
  0x67   :  { %v99_v43 = vpop.permute.xlu2 %98 }
  0x68   :  { %v116_v51 = vmul.f32 %v99_v43, %v88_v11 }
  0x84   :  { %v439_v18 = vpop.f32.mrf.mxu0 }
  0x85   :  { %v92_v20 = vadd.f32 %v88_v11, %v439_v18  ;;  %v120_v1 = vadd.f32 %v116_v51, %v439_v18 }
  0x87   :  { %v124_v23 = vmax.f32 %v92_v20, 1.0 }
  0x8c   :  { %v436_v15 = vpop.f32.mrf.mxu3 }
  0x8d   :  { %v93_v27 = vadd.f32 %v451_v26, %v436_v15 }
  0x8f   :  { %v125_v28 = vmax.f32 %v93_v27, 1.0 }
  0x94   :  { %v82_v16 = vpop.f32.mrf.mxu3 }
  0x95   :  { %v94_v17 = vadd.f32 %v407_v2, %v82_v16  ;;  %v122_v49 = vadd.f32 %v118_v39, %v82_v16 }
  0x97   :  { %v126_v19 = vmax.f32 %v94_v17, 1.0 }
  0x99   :  { %140 = vperm.xlu0 %330, %v126_v19  }
  0x9c   :  { %v445_v22 = vpop.f32.mrf.mxu3 }
  0x9d   :  { %v95_v24 = vadd.f32 %v91_v21, %v445_v22 }
  0x9f   :  { %v127_v25 = vmax.f32 %v95_v24, 1.0 }
  0xa1   :  { %130 = vperm.xlu0 %330, %v124_v23   ;;  %145 = vperm.xlu1 %331, %v127_v25  }
  0xa9   :  { %113 = vperm.xlu0 %330, %v91_v21   ;;  %135 = vperm.xlu1 %331, %v125_v28  }
  0xb1   :  { %103 = vperm.xlu1 %331, %v451_v26  }
 0x10b   :  { %v141_v30 = vpop.permute.xlu0 %140 }
 0x10c   :  { %334 = vrcp.f32 %v141_v30  ;;  %v189_v38 = vand.u32 2147483648, %v141_v30  ;;  %v187_v40 = vand.u32 2147483647, %v141_v30  ;;  %vm183_vm6 = vweird.f32 %v141_v30 }
 0x10e   :  { %v190_v45 = vor.u32 1.1754944e-38, %v189_v38  ;;  %vm188_vm8 = vcmp.eq.f32.partialorder %v187_v40, 8.507059e+37 }
 0x112   :  { %v335_v32 = vpop.eup %334 }
 0x113   :  { %v179_v33 = vmul.f32 %v335_v32, %v141_v30  ;;  %v131_v34 = vpop.permute.xlu0 %130  ;;  %v146_v35 = vpop.permute.xlu1 %145  ;;  %vm184_vm5 = vweird.f32 %v335_v32 }
 0x114   :  { %336 = vrcp.f32 %v131_v34  ;;  %vm185_vm7 = vmor %vm183_vm6, %vm184_vm5  ;;  %v157_v55 = vand.u32 2147483647, %v131_v34  ;;  %v159_v56 = vand.u32 2147483648, %v131_v34  ;;  %v204_v60 = vand.u32 2147483648, %v146_v35 }
 0x115   :  { %v180_v36 = vsub.f32 1.0, %v179_v33  ;;  %338 = vrcp.f32 %v146_v35  ;;  %v202_v61 = vand.u32 2147483647, %v146_v35  ;;  %vm153_vm11 = vweird.f32 %v131_v34 }
 0x116   :  { %v160_v5 = vor.u32 1.1754944e-38, %v159_v56  ;;  %vm198_vm13 = vweird.f32 %v146_v35  ;;  %vm158_vm14 = vcmp.eq.f32.partialorder %v157_v55, 8.507059e+37  ;;  %v205_v11 = vor.u32 1.1754944e-38, %v204_v60 }
 0x117   :  { %v181_v37 = vmul.f32 %v335_v32, %v180_v36  ;;  %vm203_vm0 = vcmp.eq.f32.partialorder %v202_v61, 8.507059e+37  ;;  %vm286_vm6 = vcmask 57344  }
 0x118   :  { %287 = vst.msk [vmem:[#allocation2] sm:$0x1] %vm286_vm6, %v369_v7 }
 0x119   :  { %v182_v41 = vadd.f32 %v335_v32, %v181_v37 }
 0x11a   :  { %v337_v42 = vpop.eup %336 }
 0x11b   :  { %v339_v44 = vpop.eup %338  ;;  %v149_v46 = vmul.f32 %v337_v42, %v131_v34  ;;  %v462_v47 = vpop.permute.xlu1 %135  ;;  %v186_v48 = vsel %vm185_vm7, %v335_v32, %v182_v41  ;;  %vm154_vm9 = vweird.f32 %v337_v42 }
 0x11c   :  { %v194_v50 = vmul.f32 %v339_v44, %v146_v35  ;;  %340 = vrcp.f32 %v462_v47  ;;  %v114_v53 = vpop.permute.xlu0 %113  ;;  %v191_v54 = vsel %vm188_vm8, %v190_v45, %v186_v48  ;;  %vm199_vm10 = vweird.f32 %v339_v44  ;;  %vm470_vm12 = vmor %vm153_vm11, %vm154_vm9 }
 0x11d   :  { %v150_v52 = vsub.f32 1.0, %v149_v46  ;;  %v192_v58 = vmul.f32 %v191_v54, %v122_v49  ;;  %v119_v63 = vmul.f32 %v114_v53, %v91_v21  ;;  %vm200_vm15 = vmor %vm198_vm13, %vm199_vm10  ;;  %v174_v27 = vand.u32 2147483648, %v462_v47 }
 0x11e   :  { %v195_v57 = vsub.f32 1.0, %v194_v50  ;;  %v172_v28 = vand.u32 2147483647, %v462_v47  ;;  %vm168_vm3 = vweird.f32 %v462_v47 }
 0x11f   :  { %v151_v59 = vmul.f32 %v337_v42, %v150_v52  ;;  %210 = vst.msk [vmem:[%s517_s4 + $0x10] sm:$0xff] %vm46_vm1, %v192_v58  ;;  %v214_v0 = vmax.f32 %v192_v58, 1.0  ;;  %v123_v17 = vadd.f32 %v119_v63, %v445_v22  ;;  %v175_v34 = vor.u32 1.1754944e-38, %v174_v27 }
 0x120   :  { %v196_v62 = vmul.f32 %v339_v44, %v195_v57  ;;  %vm173_vm5 = vcmp.eq.f32.partialorder %v172_v28, 8.507059e+37  ;;  %v288_v57 = vld [vmem:[#allocation2] sm:$0x1] }
 0x121   :  { %v152_v2 = vadd.f32 %v337_v42, %v151_v59  ;;  %v218_v9 = vmin.f32 %v214_v0, 5.0 }
 0x122   :  { %v341_v3 = vpop.eup %340  ;;  %v197_v6 = vadd.f32 %v339_v44, %v196_v62 }
 0x123   :  { %v164_v13 = vmul.f32 %v341_v3, %v462_v47  ;;  %v156_v16 = vsel %vm470_vm12, %v337_v42, %v152_v2  ;;  %323 = vmatmul.msk.f32.vlgmr.msra.gmra.mxu2 %vm46_vm1, %v218_v9  ;;  %v104_v19 = vpop.permute.xlu1 %103  ;;  %vm169_vm2 = vweird.f32 %v341_v3 }
 0x124   :  { %v201_v18 = vsel %vm200_vm15, %v339_v44, %v197_v6  ;;  %v161_v20 = vsel %vm158_vm14, %v160_v5, %v156_v16  ;;  %v117_v30 = vmul.f32 %v104_v19, %v451_v26  ;;  %vm170_vm4 = vmor %vm168_vm3, %vm169_vm2 }
 0x125   :  { %v206_v21 = vsel %vm203_vm0, %v205_v11, %v201_v18  ;;  %v165_v23 = vsub.f32 1.0, %v164_v13  ;;  %v162_v24 = vmul.f32 %v161_v20, %v120_v1 }
 0x126   :  { %v207_v25 = vmul.f32 %v206_v21, %v123_v17  ;;  %v121_v36 = vadd.f32 %v117_v30, %v436_v15 }
 0x127   :  { %v166_v29 = vmul.f32 %v341_v3, %v165_v23  ;;  %208 = vst.msk [vmem:[%s517_s4] sm:$0xff] %vm46_vm1, %v162_v24  ;;  %v212_v22 = vmax.f32 %v162_v24, 1.0 }
 0x128   :  { %211 = vst.msk [vmem:[%s517_s4 + $0x18] sm:$0xff] %vm46_vm1, %v207_v25  ;;  %v215_v31 = vmax.f32 %v207_v25, 1.0 }
 0x129   :  { %v167_v32 = vadd.f32 %v341_v3, %v166_v29  ;;  %v216_v33 = vmin.f32 %v212_v22, 5.0 }
 0x12a   :  { %v219_v35 = vmin.f32 %v215_v31, 5.0 }
 0x12b   :  { %v171_v26 = vsel %vm170_vm4, %v341_v3, %v167_v32  ;;  %321 = vmatmul.msk.f32.vlgmr.msra.gmra.mxu1 %vm46_vm1, %v216_v33 }
 0x12c   :  { %v176_v37 = vsel %vm173_vm5, %v175_v34, %v171_v26  ;;  %324 = vmatmul.msk.f32.gmra.mxu2 %vm46_vm1, %v219_v35 }
 0x12d   :  { %v177_v38 = vmul.f32 %v176_v37, %v121_v36 }
 0x12f   :  { %209 = vst.msk [vmem:[%s517_s4 + $0x8] sm:$0xff] %vm46_vm1, %v177_v38  ;;  %v213_v39 = vmax.f32 %v177_v38, 1.0  ;;  %s370_s4 = smov [#allocation2]  }
 0x130   :  { %s299_s11 = sshll.u32 %s370_s4, 4  ;;  %s300_s11 = int_to_ptr.vmem [resolvable:$true] %s299_s11 }
 0x131   :  { %v217_v40 = vmin.f32 %v213_v39, 5.0 }
 0x133   :  { %322 = vmatmul.msk.f32.gmra.mxu1 %vm46_vm1, %v217_v40 }
 0x1a6   :  { %v259_v15 = vpop.f32.mrf.mxu2 }
 0x1a7   :  { %v267_v45 = vmul.f32 %v427_v12, %v259_v15 }
 0x1a8   :  { %v253_v41 = vpop.f32.mrf.mxu1 }
 0x1a9   :  { %v265_v42 = vmul.f32 %v414_v8, %v253_v41  ;;  %v272_v51 = vsel %vm46_vm1, %v267_v45, 0.0 }
 0x1ab   :  { %v269_v47 = vsel %vm46_vm1, %v265_v42, 0.0 }
 0x1af   :  { %v262_v43 = vpop.f32.mrf.mxu2 }
 0x1b0   :  { %v256_v44 = vpop.f32.mrf.mxu1  ;;  %v268_v48 = vmul.f32 %v432_v14, %v262_v43 }
 0x1b1   :  { %v266_v46 = vmul.f32 %v419_v10, %v256_v44 }
 0x1b2   :  { %v274_v52 = vsel %vm46_vm1, %v268_v48, 0.0 }
 0x1b3   :  { %v270_v49 = vsel %vm46_vm1, %v266_v46, 0.0 }
 0x1b4   :  { %v271_v50 = vadd.f32 %v270_v49, %v269_v47 }
 0x1b6   :  { %v273_v7 = vadd.f32 %v272_v51, %v271_v50 }
 0x1b8   :  { %v275_v53 = vadd.f32 %v274_v52, %v273_v7 }
 0x1ba   :  { %v276_v8 = vrot.slane %v275_v53, 4 }
 0x1bc   :  { %v277_v54 = vadd.f32 %v276_v8, %v275_v53 }
 0x1be   :  { %v278_v55 = vrot.slane %v277_v54, 2 }
 0x1c0   :  { %v279_v56 = vadd.f32 %v278_v55, %v277_v54 }
 0x1c2   :  { %v280_v12 = vrot.slane %v279_v56, 1 }
 0x1c4   :  { %v281_v10 = vadd.f32 %v280_v12, %v279_v56 }
 0x1c6   :  { %v289_v14 = vadd.f32 %v288_v57, %v281_v10 }
 0x1c8   :  { %291 = vst.msk [vmem:[#allocation2] sm:$0x1] %vm286_vm6, %v289_v14 }
 0x1c9   :  { %304 = dma.vmem_to_hbm [thread:$0]  %s300_s11, 16, %s302_s14, [#allocation3]  }
 0x1ca   :  { %366 = dma.done.wait [#allocation3], 16  }
 0x1cb   :  { %367 = vsyncadd [#allocation3], 4294967280 }
 0x1cc   :  { %311 = vsyncpa [#allocation3], 1 }

</bundles_post_ra>
